<compile_context>
chip_gen: v5e
topology: v5e:2x2
jax: 0.10.0
libtpu: 0.0.40
codegen_flags: <defaults>
</compile_context>

<pallas_src>
import functools

import jax
import jax.numpy as jnp
from jax.experimental import pallas as pl
from jax.experimental.pallas import tpu as pltpu


def _round_up(v, m):
    return -(-v // m) * m


def _pll_kernel(x_ref, y_ref, out_ref, *, losstype):
    # x_ref / y_ref: (C, TILE_N) -- classes on sublanes, batch on lanes.
    x = x_ref[...].astype(jnp.float32)
    y = y_ref[...].astype(jnp.float32)

    m = jnp.max(x, axis=0, keepdims=True)                      # (1, T)
    shifted = x - m                                            # (C, T)
    ex = jnp.exp(shifted)                                      # (C, T) EUP
    log_denom = jnp.log(jnp.sum(ex, axis=0, keepdims=True))    # (1, T)

    if losstype == "cc":
        # -log(sum_c softmax * y)
        #   = log(sum exp(x-m)) + m - m_cand - log(sum exp(x-m_cand) * y)
        # with m_cand = max over candidate (y>0) logits: avoids underflow of
        # the candidate sum when all candidates sit far below the row max.
        neg_inf = jnp.float32(-jnp.inf)
        m_cand = jnp.max(jnp.where(y > 0, x, neg_inf), axis=0, keepdims=True)
        m_cand = jnp.where(jnp.isfinite(m_cand), m_cand, m)    # all-zero rows
        cand = jnp.sum(jnp.exp(x - m_cand) * y, axis=0, keepdims=True)
        loss = log_denom + (m - m_cand) - jnp.log(cand)
    elif losstype in ("ce", "rc"):
        # -sum_c w * log_softmax == (sum_c w) * log(denom) - sum_c w * shifted
        sum_y = jnp.sum(y, axis=0, keepdims=True)
        loss = sum_y * log_denom - jnp.sum(y * shifted, axis=0, keepdims=True)
    else:
        raise ValueError(f"unsupported losstype {losstype!r}")

    out_ref[...] = loss                                        # (1, TILE_N)


def pll_loss_cn(pred_cn, partial_y_cn, *, losstype="cc", reduce=True,
                tile_n=32768):
    """PLL_loss forward, class-major fast path (no transpose, no padding).

    pred_cn:      (C, N) logits, any float dtype (bf16/f32).
    partial_y_cn: (C, N) candidate-label weights ('cc'/'ce') or confidence
                  columns self.conf[index].T ('rc').
    Returns a scalar (reduce=True) or (N,) per-sample loss (reduce=False).
    """
    c, n = pred_cn.shape
    assert partial_y_cn.shape == (c, n)

    # Lane-tile selection: multiple of 128, capped to fit default scoped VMEM
    # on all generations, and small enough that the parallel grid has >= 2
    # steps whenever possible (v7x megacore sharding).
    n_ceil = _round_up(n, 128)
    tile = max(128, min(tile_n, n_ceil))
    if n_ceil >= 256:
        tile = min(tile, _round_up(n_ceil // 2, 128))
    num_tiles = pl.cdiv(n, tile)
    if num_tiles == 1:
        tile = n  # full-extent lane block: always legal, no edge padding

    kernel = functools.partial(_pll_kernel, losstype=losstype)
    out = pl.pallas_call(
        kernel,
        out_shape=jax.ShapeDtypeStruct((1, n), jnp.float32),
        grid=(num_tiles,),
        in_specs=[
            pl.BlockSpec((c, tile), lambda i: (0, i)),   # logits tile
            pl.BlockSpec((c, tile), lambda i: (0, i)),   # partial-label tile
        ],
        out_specs=pl.BlockSpec((1, tile), lambda i: (0, i)),
        compiler_params=pltpu.CompilerParams(
            dimension_semantics=("parallel",),
        ),
    )(pred_cn, partial_y_cn)

    per_sample = out[0]
    return jnp.mean(per_sample) if reduce else per_sample


def pll_loss(pred, partial_y, *, losstype="cc", reduce=True, tile_n=32768):
    """PLL_loss forward with module-native (N, C) layout.

    pred:      (N, C) logits.
    partial_y: (N, C) candidate-label weights (or self.conf[index] for 'rc').
    """
    n, c = pred.shape
    assert partial_y.shape == (n, c)
    # TODO(synk): these .T copies are a full extra HBM pass per input; the
    # producing matmul should emit logits class-major (transpose its output
    # for free) and the partial-label / conf matrix should be cached
    # class-major once per epoch, then call pll_loss_cn directly.
    return pll_loss_cn(pred.T, partial_y.T, losstype=losstype, reduce=reduce,
                       tile_n=tile_n)


def pll_loss_ref(pred, partial_y, *, losstype="cc", reduce=True):
    """Pure-JAX reference mirroring PLL_loss.forward_cc / forward_ce."""
    x = pred.astype(jnp.float32)
    y = partial_y.astype(jnp.float32)
    if losstype == "cc":
        loss = -jnp.log(jnp.sum(jax.nn.softmax(x, axis=1) * y, axis=1))
    elif losstype in ("ce", "rc"):
        loss = -jnp.sum(jax.nn.log_softmax(x, axis=1) * y, axis=1)
    else:
        raise ValueError(losstype)
    return jnp.mean(loss) if reduce else loss


if __name__ == "__main__":
    batch, num_classes = 32, 10

    key = jax.random.PRNGKey(0)
    k1, k2, k3 = jax.random.split(key, 3)
    logits = jax.random.normal(k1, (batch, num_classes), dtype=jnp.float32) * 2.0
    true_labels = jax.random.randint(k2, (batch,), 0, num_classes, dtype=jnp.int32)
    extras = (jax.random.uniform(k3, (batch, num_classes)) < 0.3).astype(jnp.float32)
    # Partial-label matrix: true label always a candidate, plus random extras.
    partial_y = jnp.clip(
        jax.nn.one_hot(true_labels, num_classes, dtype=jnp.float32) + extras, 0.0, 1.0
    )

    for lt in ("cc", "ce"):
        # (N, C) module-semantics wrapper.
        got = jax.block_until_ready(pll_loss(logits, partial_y, losstype=lt))
        ref = pll_loss_ref(logits, partial_y, losstype=lt)
        assert jnp.allclose(got, ref, rtol=1e-5, atol=1e-5), (lt, got, ref)

        got_v = jax.block_until_ready(
            pll_loss(logits, partial_y, losstype=lt, reduce=False)
        )
        ref_v = pll_loss_ref(logits, partial_y, losstype=lt, reduce=False)
        assert jnp.allclose(got_v, ref_v, rtol=1e-5, atol=1e-5), lt

        # Class-major fast path (no transpose inside the wrapper).
        got_cn = jax.block_until_ready(
            pll_loss_cn(logits.T, partial_y.T, losstype=lt)
        )
        assert jnp.allclose(got_cn, ref, rtol=1e-5, atol=1e-5), (lt, got_cn, ref)

    # bf16 logits path (smaller DMA bytes, in-kernel upcast to f32).
    logits_bf16 = logits.astype(jnp.bfloat16)
    got_bf = jax.block_until_ready(
        pll_loss_cn(logits_bf16.T, partial_y.T, losstype="cc")
    )
    ref_bf = pll_loss_ref(logits_bf16, partial_y, losstype="cc")
    assert jnp.allclose(got_bf, ref_bf, rtol=1e-4, atol=1e-4), (got_bf, ref_bf)

    print("KERNEL_OK")
</pallas_src>

<mosaic_0001>
module attributes {stable_mosaic.version = 11 : i64} {
  func.func @_pll_kernel(%arg0: i32, %arg1: memref<10x32xf32, #tpu.memory_space<vmem>>, %arg2: memref<10x32xf32, #tpu.memory_space<vmem>>, %arg3: memref<1x32xf32, #tpu.memory_space<vmem>>) attributes {dimension_semantics = [#tpu.dimension_semantics<parallel>], iteration_bounds = array<i64: 1>, scalar_prefetch = 0 : i64, scratch_operands = 0 : i64, tpu.core_type = #tpu.core_type<tc>, window_params = [{transform_indices = @transform_0, window_bounds = array<i64: 10, 32>}, {transform_indices = @transform_1, window_bounds = array<i64: 10, 32>}, {transform_indices = @transform_2, window_bounds = array<i64: 1, 32>}]} {
    %c0 = arith.constant 0 : index
    %c0_0 = arith.constant 0 : index
    %0 = vector.load %arg1[%c0, %c0_0] : memref<10x32xf32, #tpu.memory_space<vmem>>, vector<10x32xf32>
    %c0_1 = arith.constant 0 : index
    %c0_2 = arith.constant 0 : index
    %1 = vector.load %arg2[%c0_1, %c0_2] : memref<10x32xf32, #tpu.memory_space<vmem>>, vector<10x32xf32>
    %cst = arith.constant dense<0xFF800000> : vector<32xf32>
    %2 = vector.multi_reduction <maximumf>, %0, %cst [0] : vector<10x32xf32> to vector<32xf32>
    %3 = vector.shape_cast %2 : vector<32xf32> to vector<1x32xf32>
    %4 = vector.broadcast %3 : vector<1x32xf32> to vector<10x32xf32>
    %5 = arith.subf %0, %4 : vector<10x32xf32>
    %6 = math.exp %5 : vector<10x32xf32>
    %cst_3 = arith.constant dense<0.000000e+00> : vector<32xf32>
    %7 = vector.multi_reduction <add>, %6, %cst_3 [0] : vector<10x32xf32> to vector<32xf32>
    %8 = vector.shape_cast %7 : vector<32xf32> to vector<1x32xf32>
    %9 = math.log %8 : vector<1x32xf32>
    %cst_4 = arith.constant 0.000000e+00 : f32
    %10 = vector.broadcast %cst_4 : f32 to vector<10x32xf32>
    %11 = arith.cmpf ogt, %1, %10 : vector<10x32xf32>
    %cst_5 = arith.constant 0xFF800000 : f32
    %12 = vector.broadcast %cst_5 : f32 to vector<10x32xf32>
    %13 = arith.select %11, %0, %12 : vector<10x32xi1>, vector<10x32xf32>
    %cst_6 = arith.constant dense<0xFF800000> : vector<32xf32>
    %14 = vector.multi_reduction <maximumf>, %13, %cst_6 [0] : vector<10x32xf32> to vector<32xf32>
    %15 = vector.shape_cast %14 : vector<32xf32> to vector<1x32xf32>
    %16 = tpu.weird %15 : vector<1x32xf32> -> vector<1x32xi1>
    %cst_7 = arith.constant dense<true> : vector<1x32xi1>
    %17 = arith.xori %16, %cst_7 : vector<1x32xi1>
    %18 = arith.select %17, %15, %3 : vector<1x32xi1>, vector<1x32xf32>
    %19 = vector.broadcast %18 : vector<1x32xf32> to vector<10x32xf32>
    %20 = arith.subf %0, %19 : vector<10x32xf32>
    %21 = math.exp %20 : vector<10x32xf32>
    %22 = arith.mulf %21, %1 : vector<10x32xf32>
    %cst_8 = arith.constant dense<0.000000e+00> : vector<32xf32>
    %23 = vector.multi_reduction <add>, %22, %cst_8 [0] : vector<10x32xf32> to vector<32xf32>
    %24 = vector.shape_cast %23 : vector<32xf32> to vector<1x32xf32>
    %25 = arith.subf %3, %18 : vector<1x32xf32>
    %26 = arith.addf %9, %25 : vector<1x32xf32>
    %27 = math.log %24 : vector<1x32xf32>
    %28 = arith.subf %26, %27 : vector<1x32xf32>
    %c0_9 = arith.constant 0 : index
    %c0_10 = arith.constant 0 : index
    %29 = vector.load %arg3[%c0_9, %c0_10] : memref<1x32xf32, #tpu.memory_space<vmem>>, vector<1x32xf32>
    tpu.vector_store %arg3[%c0_9, %c0_10], %28 {strides = array<i32>} : memref<1x32xf32, #tpu.memory_space<vmem>>, vector<1x32xf32>,
    return
  }
  func.func @transform_0(%arg0: i32) -> (i32, i32) {
    %c0_i32 = arith.constant 0 : i32
    %c0_i32_0 = arith.constant 0 : i32
    return %c0_i32, %arg0 : i32, i32
  }
  func.func @transform_1(%arg0: i32) -> (i32, i32) {
    %c0_i32 = arith.constant 0 : i32
    %c0_i32_0 = arith.constant 0 : i32
    return %c0_i32, %arg0 : i32, i32
  }
  func.func @transform_2(%arg0: i32) -> (i32, i32) {
    %c0_i32 = arith.constant 0 : i32
    %c0_i32_0 = arith.constant 0 : i32
    return %c0_i32, %arg0 : i32, i32
  }
}

</mosaic_0001>

<bundles_post_ra>
// kernel: tpu_custom_call.1
= control target key start
LH: loop header
LB: loop body
LE: loop exit
PB: predicated region body
PF: predicated region fallthrough
CT: control target
= control target key end

     0   :  { %7 = vsyncpa [#allocation3], 0  ;;  %s268_s0 = inlined_call_operand.hbm [shape: f32[10,32], index: 0, kind: input, shape index: {}]   ;;  %s269_s1 = inlined_call_operand.hbm [shape: f32[10,32], index: 1, kind: input, shape index: {}]   ;;  %s270_s2 = inlined_call_operand.hbm [shape: f32[1,32], index: 2, kind: output, shape index: {}]  }
   0x1   :  { %8 = vsyncpa [#allocation6], 0 }
   0x2   :  { %9 = vsyncpa [#allocation4], 0  ;;  %s14_s11 = sshll.u32 %s268_s0, 4  ;;  %s230_s12 = smov [#allocation2]   ;;  %s15_s11 = int_to_ptr.hbm [resolvable:$true] %s14_s11 }
   0x3   :  { %s16_s13 = sshll.u32 %s230_s12, 4  ;;  %s27_s16 = sshll.u32 %s269_s1, 4  ;;  %s17_s13 = int_to_ptr.vmem [resolvable:$true] %s16_s13  ;;  %s28_s16 = int_to_ptr.hbm [resolvable:$true] %s27_s16 }
   0x4   :  { %s231_s17 = smov 128   ;;  %s232_s18 = smov 8  }
   0x5   :  { %22 = dma.hbm_to_vmem [thread:$0]  %s15_s11, 256, %s17_s13, [#allocation3], %s231_s17, %s231_s17, %s232_s18  }
   0x6   :  { %s233_s19 = smov [#allocation5]  }
   0x7   :  { %s29_s20 = sshll.u32 %s233_s19, 4  ;;  %s30_s20 = int_to_ptr.vmem [resolvable:$true] %s29_s20 }
   0x8   :  { %35 = dma.hbm_to_vmem [thread:$0]  %s28_s16, 256, %s30_s20, [#allocation6], %s231_s17, %s231_s17, %s232_s18  }
   0x9   :  { %224 = dma.done.wait [#allocation3], 256  }
   0xa   :  { %225 = vsyncadd [#allocation3], 4294967040 }
   0xb   :  { %226 = dma.done.wait [#allocation6], 256  }
   0xc   :  { %227 = vsyncadd [#allocation6], 4294967040  ;;  %v44_v0 = vld [vmem:[#allocation2] sm:$0xff]  ;;  %v45_v1 = vld [vmem:[#allocation2 + $0x8] sm:$0x3]  ;;  %vm48_vm0 = vcmask 261120  }
   0xd   :  { %v46_v2 = vld [vmem:[#allocation5] sm:$0xff]  ;;  %vm50_vm1 = vcmask 254976   ;;  %v47_v3 = vld [vmem:[#allocation5 + $0x8] sm:$0x3]  ;;  %v49_v4 = vsel %vm48_vm0, %v44_v0, -inf  ;;  %vm234_vm5 = vmmov 1  }
   0xe   :  { %v51_v5 = vsel %vm50_vm1, %v45_v1, -inf  ;;  %vm76_vm2 = vcmp.gt.f32.partialorder %v46_v2, 0.0  ;;  %vm77_vm3 = vcmp.gt.f32.partialorder %v47_v3, 0.0  ;;  %s235_s0 = smov [#allocation7]   ;;  %s123_s23 = sshll.u32 %s270_s2, 4  ;;  %vm114_vm7 = vcmask 253952   ;;  %s124_s23 = int_to_ptr.hbm [resolvable:$true] %s123_s23 }
   0xf   :  { %v52_v6 = vmax.f32 %v49_v4, %v51_v5  ;;  %v78_v7 = vsel %vm76_vm2, %v44_v0, -inf  ;;  %v79_v8 = vsel %vm77_vm3, %v45_v1, -inf  ;;  %s121_s1 = sshll.u32 %s235_s0, 4  ;;  %s122_s1 = int_to_ptr.vmem [resolvable:$true] %s121_s1 }
  0x10   :  { %v80_v9 = vsel %vm48_vm0, %v78_v7, -inf  ;;  %v81_v11 = vsel %vm50_vm1, %v79_v8, -inf }
  0x11   :  { %v53_v10 = vrot.slane %v52_v6, 4  ;;  %v82_v12 = vmax.f32 %v80_v9, %v81_v11 }
  0x13   :  { %v54_v13 = vmax.f32 %v52_v6, %v53_v10  ;;  %v83_v14 = vrot.slane %v82_v12, 4 }
  0x15   :  { %v55_v15 = vrot.slane %v54_v13, 2  ;;  %v84_v16 = vmax.f32 %v82_v12, %v83_v14 }
  0x17   :  { %v56_v17 = vmax.f32 %v54_v13, %v55_v15  ;;  %v85_v18 = vrot.slane %v84_v16, 2 }
  0x19   :  { %v57_v19 = vrot.slane %v56_v17, 1  ;;  %v86_v20 = vmax.f32 %v84_v16, %v85_v18 }
  0x1b   :  { %v58_v21 = vmax.f32 %v56_v17, %v57_v19  ;;  %v87_v22 = vrot.slane %v86_v20, 1 }
  0x1d   :  { %v59_v23 = vsub.f32 %v44_v0, %v58_v21  ;;  %v60_v24 = vsub.f32 %v45_v1, %v58_v21  ;;  %v88_v25 = vmax.f32 %v86_v20, %v87_v22 }
  0x1f   :  { %v61_v26 = vmul.f32 1.442695, %v59_v23  ;;  %v63_v27 = vmul.f32 1.442695, %v60_v24  ;;  %vm89_vm4 = vweird.f32 %v88_v25 }
  0x20   :  { %vm90_vm6 = vmxor %vm89_vm4, %vm234_vm5 }
  0x21   :  { %140 = vpow2.f32 %v61_v26  ;;  %v91_v28 = vsel %vm90_vm6, %v88_v25, %v58_v21 }
  0x22   :  { %142 = vpow2.f32 %v63_v27  ;;  %v92_v29 = vsub.f32 %v44_v0, %v91_v28  ;;  %v93_v30 = vsub.f32 %v45_v1, %v91_v28  ;;  %v109_v59 = vsub.f32 %v58_v21, %v91_v28 }
  0x24   :  { %v94_v31 = vmul.f32 1.442695, %v92_v29  ;;  %v96_v32 = vmul.f32 1.442695, %v93_v30 }
  0x26   :  { %144 = vpow2.f32 %v94_v31 }
  0x27   :  { %v141_v33 = vpop.eup %140  ;;  %146 = vpow2.f32 %v96_v32 }
  0x28   :  { %v143_v34 = vpop.eup %142  ;;  %v65_v35 = vsel %vm48_vm0, %v141_v33, 0.0 }
  0x29   :  { %v66_v36 = vsel %vm50_vm1, %v143_v34, 0.0 }
  0x2a   :  { %v67_v37 = vadd.f32 %v66_v36, %v65_v35 }
  0x2c   :  { %v68_v38 = vrot.slane %v67_v37, 4  ;;  %v145_v39 = vpop.eup %144 }
  0x2d   :  { %v147_v40 = vpop.eup %146  ;;  %v98_v42 = vmul.f32 %v145_v39, %v46_v2 }
  0x2e   :  { %v69_v41 = vadd.f32 %v68_v38, %v67_v37  ;;  %v99_v43 = vmul.f32 %v147_v40, %v47_v3 }
  0x2f   :  { %v100_v45 = vsel %vm48_vm0, %v98_v42, 0.0 }
  0x30   :  { %v70_v44 = vrot.slane %v69_v41, 2  ;;  %v101_v46 = vsel %vm50_vm1, %v99_v43, 0.0 }
  0x31   :  { %v102_v48 = vadd.f32 %v101_v46, %v100_v45 }
  0x32   :  { %v71_v47 = vadd.f32 %v70_v44, %v69_v41 }
  0x33   :  { %v103_v50 = vrot.slane %v102_v48, 4 }
  0x34   :  { %v72_v49 = vrot.slane %v71_v47, 1 }
  0x35   :  { %v104_v52 = vadd.f32 %v103_v50, %v102_v48 }
  0x36   :  { %v73_v51 = vadd.f32 %v72_v49, %v71_v47 }
  0x37   :  { %v105_v53 = vrot.slane %v104_v52, 2 }
  0x38   :  { %148 = vlog2.f32 %v73_v51 }
  0x39   :  { %v106_v54 = vadd.f32 %v105_v53, %v104_v52 }
  0x3b   :  { %v107_v55 = vrot.slane %v106_v54, 1 }
  0x3d   :  { %v108_v57 = vadd.f32 %v107_v55, %v106_v54 }
  0x3e   :  { %v149_v56 = vpop.eup %148 }
  0x3f   :  { %150 = vlog2.f32 %v108_v57  ;;  %v75_v58 = vmul.f32 0.6931472, %v149_v56 }
  0x41   :  { %v110_v60 = vadd.f32 %v109_v59, %v75_v58 }
  0x45   :  { %v151_v61 = vpop.eup %150 }
  0x46   :  { %v112_v62 = vmul.f32 0.6931472, %v151_v61 }
  0x48   :  { %v113_v63 = vsub.f32 %v110_v60, %v112_v62 }
  0x4a   :  { %115 = vst.msk [vmem:[#allocation7] sm:$0x1] %vm114_vm7, %v113_v63 }
  0x4b   :  { %126 = dma.vmem_to_hbm [thread:$0]  %s122_s1, 16, %s124_s23, [#allocation4]  }
  0x4c   :  { %228 = dma.done.wait [#allocation4], 16  }
  0x4d   :  { %229 = vsyncadd [#allocation4], 4294967280 }
  0x4e   :  { %131 = vsyncpa [#allocation3], 1 }
  0x4f   :  { %132 = vsyncpa [#allocation6], 1 }
  0x50   :  { %133 = vsyncpa [#allocation4], 1 }

</bundles_post_ra>
